<compile_context>
chip_gen: v5e
topology: v5e:2x2
jax: 0.10.0
libtpu: 0.0.40
codegen_flags: <defaults>
</compile_context>

<pallas_src>
import functools

import jax
import jax.numpy as jnp
from jax.experimental import pallas as pl
from jax.experimental.pallas import tpu as pltpu


# 3x3 one-hot kernel positions (a, b) for f, b, l, r, fl, fr, bl, br.
# conv2d(x, w, padding=1) with w one-hot at (a, b)  =>  out[i, j] = xpad[i+a, j+b]
_NEIGHBOR_OFFSETS = (
    (0, 1),  # f
    (2, 1),  # b
    (1, 0),  # l
    (1, 2),  # r
    (0, 0),  # fl
    (0, 2),  # fr
    (2, 0),  # bl
    (2, 2),  # br
)


def _grad_std_kernel(m_ref, x_ref, o_ref, *, width):
    # m_ref : (5, HW)  per-pixel constants [mask_l, mask_r, mask_u, mask_d, k_oob]
    # x_ref : (TN, HW) flattened images (lane-dense last dim)
    # o_ref : (TN, HW) flattened std output
    _, HW = o_ref.shape
    W = width

    x = x_ref[...].astype(jnp.float32)

    # Cheap per-image centering constant from a small leading stripe.  Any
    # constant is mathematically exact for std; this one just suppresses
    # cancellation for offset-heavy inputs without a full-tile XLU reduce.
    cs = min(HW, 256)
    c = jnp.mean(x[:, :cs], axis=1, keepdims=True)            # (TN, 1)
    xc = x - c

    ml = m_ref[0:1, :]   # 1.0 where the left  neighbour is in-bounds (j > 0)
    mr = m_ref[1:2, :]   # 1.0 where the right neighbour is in-bounds (j < W-1)
    mu = m_ref[2:3, :]   # 1.0 where the row above is in-bounds (i > 0)
    md = m_ref[3:4, :]   # 1.0 where the row below is in-bounds (i < H-1)
    kk = m_ref[4:5, :]   # number of out-of-bounds (zero-padded) neighbours

    # Horizontal neighbours as flat lane rolls; row-wrap positions are masked.
    # pltpu.roll follows the jnp.roll convention: roll(v, s)[p] = v[p - s].
    xl = pltpu.roll(xc, 1, axis=1) * ml            # xc at (i, j-1), 0 if OOB
    xr = pltpu.roll(xc, HW - 1, axis=1) * mr       # xc at (i, j+1), 0 if OOB

    sqc = xc * xc
    rs = xl + xc + xr                              # in-bounds 3-wide row sums
    rs2 = xl * xl + sqc + xr * xr                  # ... and of the squares

    # Vertical combination: roll the row sums by +/-W in the flat layout.
    box = pltpu.roll(rs, W, axis=1) * mu + rs + pltpu.roll(rs, HW - W, axis=1) * md
    box2 = pltpu.roll(rs2, W, axis=1) * mu + rs2 + pltpu.roll(rs2, HW - W, axis=1) * md

    # Sum / sum-of-squares over the 8 neighbours in the centered frame.
    # In-bounds part = 3x3 box minus the centre pixel; every zero-padded
    # neighbour contributes (0 - c) = -c once centred, hence the k terms.
    s1 = (box - xc) - kk * c
    s2 = (box2 - sqc) + kk * (c * c)

    var = (s2 - s1 * s1 * 0.125) * (1.0 / 7.0)     # unbiased (ddof=1)
    var = jnp.maximum(var, 0.0)                    # guard rounding
    o_ref[...] = jnp.sqrt(var).astype(o_ref.dtype)


def _round_up(a, b):
    return -(-a // b) * b


def _choose_tn(n, hw):
    """Images folded per grid step, from padded-layout VMEM accounting."""
    lane_pad = _round_up(hw, 128)                  # last dim pads to 128 lanes
    per_image = lane_pad * 4                       # one f32 plane per image
    live_planes = 12                               # 2x dbl-buffered in+out + ~8 temps
    budget = 24 * 1024 * 1024                      # working-set target (v7x-safe)
    cap = max(1, budget // (per_image * live_planes))
    if n <= cap:
        if n >= 16:
            # Keep >= 2 grid steps so v7x can split the batch over its 2 TCs.
            # Blocks that do not cover N must be a multiple of 8 sublanes.
            return min(n, _round_up(pl.cdiv(n, 2), 8))
        return n
    # TODO(synk): if even an 8-image block busts the budget, switch to
    # spatial halo tiling along H instead of batch tiling.
    return max(8, (cap // 8) * 8)


def get_grad_std(x):
    """x: (N, 1, H, W) float32 -> (N, H, W): unbiased std over the 8
    neighbour shift-convolutions (zero padding=1)."""
    N, C, H, W = x.shape
    assert C == 1, "Get_grad_std conv weights have in_channels=1"
    HW = H * W
    xf = x[:, 0].reshape(N, HW)                    # lane-dense flat layout

    # Per-pixel boundary constants, computed once on the XLA side and kept
    # resident in VMEM (constant block index across the grid).
    ii = jnp.arange(H, dtype=jnp.int32)[:, None]
    jj = jnp.arange(W, dtype=jnp.int32)[None, :]
    ml = jnp.broadcast_to(jj > 0, (H, W)).astype(jnp.float32)
    mr = jnp.broadcast_to(jj < W - 1, (H, W)).astype(jnp.float32)
    mu = jnp.broadcast_to(ii > 0, (H, W)).astype(jnp.float32)
    md = jnp.broadcast_to(ii < H - 1, (H, W)).astype(jnp.float32)
    k_oob = 9.0 - (1.0 + mu + md) * (1.0 + ml + mr)   # zero-padded nbr count
    masks = jnp.stack(
        [m.reshape(HW) for m in (ml, mr, mu, md, k_oob)], axis=0
    )  # (5, HW) float32

    tn = _choose_tn(N, HW)
    grid = (pl.cdiv(N, tn),)

    out_flat = pl.pallas_call(
        functools.partial(_grad_std_kernel, width=W),
        out_shape=jax.ShapeDtypeStruct((N, HW), x.dtype),
        grid=grid,
        in_specs=[
            pl.BlockSpec((5, HW), lambda n: (0, 0)),      # resident constants
            pl.BlockSpec((tn, HW), lambda n: (n, 0)),
        ],
        out_specs=pl.BlockSpec((tn, HW), lambda n: (n, 0)),
        compiler_params=pltpu.CompilerParams(
            dimension_semantics=("parallel",),
            vmem_limit_bytes=48 * 1024 * 1024,
        ),
        cost_estimate=pl.CostEstimate(
            flops=32 * N * HW,
            transcendentals=N * HW,
            bytes_accessed=(2 * N * HW + 5 * HW) * 4,
        ),
    )(masks, xf)
    return out_flat.reshape(N, H, W)


def gaussian_kernel(num_classes, kernel_size=16, sigma=3.0):
    """Deterministic construction of the blur kernel from __init__ (unused in
    forward, kept for parity): shape (1, num_classes, ks, ks)."""
    coords = jnp.arange(-(kernel_size // 2) + 1, kernel_size // 2 + 1,
                        dtype=jnp.float32)
    gx, gy = jnp.meshgrid(coords, coords, indexing="ij")
    gaussian = jnp.exp(-(gx ** 2 + gy ** 2) / (2.0 * sigma ** 2))
    gaussian = gaussian / gaussian.sum()
    return jnp.tile(gaussian[None, None, :, :], (1, num_classes, 1, 1))


def _reference(x):
    """Pure-JAX reference of the PyTorch forward (shift-convs + unbiased std)."""
    N, C, H, W = x.shape
    xp = jnp.pad(x[:, 0], ((0, 0), (1, 1), (1, 1)))
    stacks = jnp.stack(
        [xp[:, a:a + H, b:b + W] for (a, b) in _NEIGHBOR_OFFSETS], axis=1
    )  # (N, 8, H, W)
    return jnp.std(stacks, axis=1, ddof=1)


if __name__ == "__main__":
    key = jax.random.PRNGKey(0)
    N, C, H, W = 2, 1, 16, 16
    # Common offset exercises the cancellation-safe centred single-pass path.
    x = jax.random.normal(key, (N, C, H, W), dtype=jnp.float32) + 100.0

    # Parity with PyTorch __init__ (blur kernel is never used in forward).
    _blur = gaussian_kernel(num_classes=4, kernel_size=16, sigma=3.0)

    out = jax.block_until_ready(get_grad_std(x))

    ref = _reference(x)
    assert out.shape == (N, H, W)
    assert jnp.allclose(out, ref, atol=1e-3, rtol=1e-3), "mismatch vs reference"

    print("KERNEL_OK")
</pallas_src>

<mosaic_0001>
module attributes {stable_mosaic.version = 11 : i64} {
  func.func @_grad_std_kernel(%arg0: i32, %arg1: memref<5x256xf32, #tpu.memory_space<vmem>>, %arg2: memref<2x256xf32, #tpu.memory_space<vmem>>, %arg3: memref<2x256xf32, #tpu.memory_space<vmem>>) attributes {dimension_semantics = [#tpu.dimension_semantics<parallel>], iteration_bounds = array<i64: 1>, scalar_prefetch = 0 : i64, scratch_operands = 0 : i64, tpu.core_type = #tpu.core_type<tc>, window_params = [{pipeline_mode = #tpu.pipeline_mode<synchronous>, transform_indices = @transform_0, window_bounds = array<i64: 5, 256>}, {transform_indices = @transform_1, window_bounds = array<i64: 2, 256>}, {transform_indices = @transform_2, window_bounds = array<i64: 2, 256>}]} {
    %c0 = arith.constant 0 : index
    %c0_0 = arith.constant 0 : index
    %0 = vector.load %arg2[%c0, %c0_0] : memref<2x256xf32, #tpu.memory_space<vmem>>, vector<2x256xf32>
    %cst = arith.constant dense<0.000000e+00> : vector<2xf32>
    %1 = vector.multi_reduction <add>, %0, %cst [1] : vector<2x256xf32> to vector<2xf32>
    %2 = vector.shape_cast %1 : vector<2xf32> to vector<2x1xf32>
    %cst_1 = arith.constant 2.560000e+02 : f32
    %3 = vector.broadcast %cst_1 : f32 to vector<2x1xf32>
    %4 = arith.divf %2, %3 : vector<2x1xf32>
    %5 = vector.broadcast %4 : vector<2x1xf32> to vector<2x256xf32>
    %6 = arith.subf %0, %5 : vector<2x256xf32>
    %c0_2 = arith.constant 0 : index
    %c0_3 = arith.constant 0 : index
    %7 = vector.load %arg1[%c0_2, %c0_3] : memref<5x256xf32, #tpu.memory_space<vmem>>, vector<1x256xf32>
    %c1 = arith.constant 1 : index
    %c0_4 = arith.constant 0 : index
    %8 = vector.load %arg1[%c1, %c0_4] : memref<5x256xf32, #tpu.memory_space<vmem>>, vector<1x256xf32>
    %c2 = arith.constant 2 : index
    %c0_5 = arith.constant 0 : index
    %9 = vector.load %arg1[%c2, %c0_5] : memref<5x256xf32, #tpu.memory_space<vmem>>, vector<1x256xf32>
    %c3 = arith.constant 3 : index
    %c0_6 = arith.constant 0 : index
    %10 = vector.load %arg1[%c3, %c0_6] : memref<5x256xf32, #tpu.memory_space<vmem>>, vector<1x256xf32>
    %c4 = arith.constant 4 : index
    %c0_7 = arith.constant 0 : index
    %11 = vector.load %arg1[%c4, %c0_7] : memref<5x256xf32, #tpu.memory_space<vmem>>, vector<1x256xf32>
    %c1_i32 = arith.constant 1 : i32
    %12 = tpu.dynamic_rotate %6 by %c1_i32 dim 1 : vector<2x256xf32>, i32 -> vector<2x256xf32>
    %13 = vector.broadcast %7 : vector<1x256xf32> to vector<2x256xf32>
    %14 = arith.mulf %12, %13 : vector<2x256xf32>
    %c255_i32 = arith.constant 255 : i32
    %15 = tpu.dynamic_rotate %6 by %c255_i32 dim 1 : vector<2x256xf32>, i32 -> vector<2x256xf32>
    %16 = vector.broadcast %8 : vector<1x256xf32> to vector<2x256xf32>
    %17 = arith.mulf %15, %16 : vector<2x256xf32>
    %18 = arith.mulf %6, %6 : vector<2x256xf32>
    %19 = arith.addf %14, %6 : vector<2x256xf32>
    %20 = arith.addf %19, %17 : vector<2x256xf32>
    %21 = arith.mulf %14, %14 : vector<2x256xf32>
    %22 = arith.addf %21, %18 : vector<2x256xf32>
    %23 = arith.mulf %17, %17 : vector<2x256xf32>
    %24 = arith.addf %22, %23 : vector<2x256xf32>
    %c16_i32 = arith.constant 16 : i32
    %25 = tpu.dynamic_rotate %20 by %c16_i32 dim 1 : vector<2x256xf32>, i32 -> vector<2x256xf32>
    %26 = vector.broadcast %9 : vector<1x256xf32> to vector<2x256xf32>
    %27 = arith.mulf %25, %26 : vector<2x256xf32>
    %28 = arith.addf %27, %20 : vector<2x256xf32>
    %c240_i32 = arith.constant 240 : i32
    %29 = tpu.dynamic_rotate %20 by %c240_i32 dim 1 : vector<2x256xf32>, i32 -> vector<2x256xf32>
    %30 = vector.broadcast %10 : vector<1x256xf32> to vector<2x256xf32>
    %31 = arith.mulf %29, %30 : vector<2x256xf32>
    %32 = arith.addf %28, %31 : vector<2x256xf32>
    %c16_i32_8 = arith.constant 16 : i32
    %33 = tpu.dynamic_rotate %24 by %c16_i32_8 dim 1 : vector<2x256xf32>, i32 -> vector<2x256xf32>
    %34 = vector.broadcast %9 : vector<1x256xf32> to vector<2x256xf32>
    %35 = arith.mulf %33, %34 : vector<2x256xf32>
    %36 = arith.addf %35, %24 : vector<2x256xf32>
    %c240_i32_9 = arith.constant 240 : i32
    %37 = tpu.dynamic_rotate %24 by %c240_i32_9 dim 1 : vector<2x256xf32>, i32 -> vector<2x256xf32>
    %38 = vector.broadcast %10 : vector<1x256xf32> to vector<2x256xf32>
    %39 = arith.mulf %37, %38 : vector<2x256xf32>
    %40 = arith.addf %36, %39 : vector<2x256xf32>
    %41 = arith.subf %32, %6 : vector<2x256xf32>
    %42 = vector.broadcast %11 : vector<1x256xf32> to vector<2x256xf32>
    %43 = vector.broadcast %4 : vector<2x1xf32> to vector<2x256xf32>
    %44 = arith.mulf %42, %43 : vector<2x256xf32>
    %45 = arith.subf %41, %44 : vector<2x256xf32>
    %46 = arith.subf %40, %18 : vector<2x256xf32>
    %47 = arith.mulf %4, %4 : vector<2x1xf32>
    %48 = vector.broadcast %11 : vector<1x256xf32> to vector<2x256xf32>
    %49 = vector.broadcast %47 : vector<2x1xf32> to vector<2x256xf32>
    %50 = arith.mulf %48, %49 : vector<2x256xf32>
    %51 = arith.addf %46, %50 : vector<2x256xf32>
    %52 = arith.mulf %45, %45 : vector<2x256xf32>
    %cst_10 = arith.constant 1.250000e-01 : f32
    %53 = vector.broadcast %cst_10 : f32 to vector<2x256xf32>
    %54 = arith.mulf %52, %53 : vector<2x256xf32>
    %55 = arith.subf %51, %54 : vector<2x256xf32>
    %cst_11 = arith.constant 0.142857149 : f32
    %56 = vector.broadcast %cst_11 : f32 to vector<2x256xf32>
    %57 = arith.mulf %55, %56 : vector<2x256xf32>
    %cst_12 = arith.constant 0.000000e+00 : f32
    %58 = vector.broadcast %cst_12 : f32 to vector<2x256xf32>
    %59 = arith.maximumf %57, %58 : vector<2x256xf32>
    %60 = math.sqrt %59 : vector<2x256xf32>
    %c0_13 = arith.constant 0 : index
    %c0_14 = arith.constant 0 : index
    %61 = vector.load %arg3[%c0_13, %c0_14] : memref<2x256xf32, #tpu.memory_space<vmem>>, vector<2x256xf32>
    tpu.vector_store %arg3[%c0_13, %c0_14], %60 {strides = array<i32>} : memref<2x256xf32, #tpu.memory_space<vmem>>, vector<2x256xf32>,
    return
  }
  func.func @transform_0(%arg0: i32) -> (i32, i32) {
    %c0_i32 = arith.constant 0 : i32
    %c0_i32_0 = arith.constant 0 : i32
    %c0_i32_1 = arith.constant 0 : i32
    return %c0_i32, %c0_i32_0 : i32, i32
  }
  func.func @transform_1(%arg0: i32) -> (i32, i32) {
    %c0_i32 = arith.constant 0 : i32
    %c0_i32_0 = arith.constant 0 : i32
    return %arg0, %c0_i32 : i32, i32
  }
  func.func @transform_2(%arg0: i32) -> (i32, i32) {
    %c0_i32 = arith.constant 0 : i32
    %c0_i32_0 = arith.constant 0 : i32
    return %arg0, %c0_i32 : i32, i32
  }
}

</mosaic_0001>

<bundles_post_ra>
// kernel: tpu_custom_call.1
= control target key start
LH: loop header
LB: loop body
LE: loop exit
PB: predicated region body
PF: predicated region fallthrough
CT: control target
= control target key end

     0   :  { %7 = vsyncpa [#allocation3], 0  ;;  %s444_s0 = inlined_call_operand.hbm [shape: f32[5,256], index: 0, kind: input, shape index: {}]   ;;  %s445_s1 = inlined_call_operand.hbm [shape: f32[2,256], index: 1, kind: input, shape index: {}]   ;;  %s446_s2 = inlined_call_operand.hbm [shape: f32[2,256], index: 2, kind: output, shape index: {}]  }
   0x1   :  { %8 = vsyncpa [#allocation6], 0 }
   0x2   :  { %9 = vsyncpa [#allocation4], 0  ;;  %s15_s11 = sshll.u32 %s444_s0, 4  ;;  %s373_s12 = smov [#allocation2]   ;;  %s16_s11 = int_to_ptr.hbm [resolvable:$true] %s15_s11 }
   0x3   :  { %s17_s13 = sshll.u32 %s373_s12, 4  ;;  %s26_s16 = sshll.u32 %s445_s1, 4  ;;  %s18_s13 = int_to_ptr.vmem [resolvable:$true] %s17_s13  ;;  %s27_s16 = int_to_ptr.hbm [resolvable:$true] %s26_s16 }
   0x4   :  { %20 = dma.hbm_to_vmem [thread:$0]  %s16_s11, 256, %s18_s13, [#allocation3]  }
   0x5   :  { %s374_s17 = smov [#allocation5]  }
   0x6   :  { %s28_s18 = sshll.u32 %s374_s17, 4  ;;  %s29_s18 = int_to_ptr.vmem [resolvable:$true] %s28_s18 }
   0x7   :  { %31 = dma.hbm_to_vmem [thread:$0]  %s27_s16, 64, %s29_s18, [#allocation6]  }
   0x8   :  { %367 = dma.done.wait [#allocation3], 256  }
   0x9   :  { %368 = vsyncadd [#allocation3], 4294967040 }
   0xa   :  { %369 = dma.done.wait [#allocation6], 64  }
   0xb   :  { %370 = vsyncadd [#allocation6], 4294967232  ;;  %v40_v0 = vld [vmem:[#allocation5] sm:$0xf]  ;;  %vm47_vm0 = vcmask 1041408   ;;  %v375_v6 = vmov 256.0   ;;  %v87_v31 = vlaneseq }
   0xc   :  { %42 = vst [vmem:[#allocation1] ss:$4 sm:$0xff] %v40_v0  ;;  %289 = vrcp.f32 %v375_v6  ;;  %v376_v12 = vmov 269488144   ;;  %s377_s0 = smov 1   ;;  %s378_s1 = smov 127  }
   0xd   :  { %v63_v13 = vunpack.c.l.s4 %v376_v12  ;;  %v412_v32 = vand.u32 127, %v87_v31  ;;  %v68_v33 = vld [vmem:[#allocation2] ss:$8 sm:$0x3]  ;;  %s379_s19 = smov 16   ;;  %s380_s20 = smov 112  }
   0xe   :  { %v94_v35 = vperm.slane %v68_v33, 1  ;;  %v93_v38 = vperm.slane %v68_v33, 0  ;;  %v70_v40 = vld [vmem:[#allocation2 + $0x1] ss:$8 sm:$0x3]  ;;  %s381_s21 = smov [#allocation7]  }
   0xf   :  { %v64_v15 = vunpack.c.0.s8 %v63_v13  ;;  %vm89_vm2 = vcmp.lt.s32.totalorder %v412_v32, 1  ;;  %vm108_vm3 = vcmp.lt.s32.totalorder %v412_v32, 127  ;;  %v112_v43 = vperm.slane %v70_v40, 0  ;;  %s267_s22 = sshll.u32 %s381_s21, 4  ;;  %s269_s25 = sshll.u32 %s446_s2, 4  ;;  %s268_s22 = int_to_ptr.vmem [resolvable:$true] %s267_s22  ;;  %s270_s25 = int_to_ptr.hbm [resolvable:$true] %s269_s25 }
  0x10   :  { %v113_v44 = vperm.slane %v70_v40, 1  ;;  %vm146_vm4 = vcmp.lt.s32.totalorder %v412_v32, 16  ;;  %vm162_vm5 = vcmp.lt.s32.totalorder %v412_v32, 112 }
  0x12   :  { %v290_v7 = vpop.eup %289 }
  0x13   :  { %v43_v1 = vld.sshfl [vmem:[#allocation1] sm:$0xff pattern:$0x73625140]  ;;  %v44_v2 = vld.sshfl [vmem:[#allocation1 + $0x8] sm:$0xff pattern:$0x73625140]  ;;  %vm58_vm1 = vweird.f32 %v290_v7 }
  0x14   :  { %v48_v3 = vsel %vm47_vm0, %v43_v1, 0.0  ;;  %v49_v4 = vsel %vm47_vm0, %v44_v2, 0.0  ;;  %v54_v8 = vmul.f32 256.0, %v290_v7  ;;  %v72_v1 = vld [vmem:[#allocation2 + $0x2] ss:$8 sm:$0x3] }
  0x15   :  { %v50_v5 = vadd.f32 %v49_v4, %v48_v3  ;;  %v150_v3 = vperm.slane %v72_v1, 0  ;;  %v151_v4 = vperm.slane %v72_v1, 1 }
  0x16   :  { %v55_v9 = vsub.f32 1.0, %v54_v8  ;;  %v76_v8 = vld [vmem:[#allocation2 + $0x4] ss:$8 sm:$0x3] }
  0x17   :  { %51 = vadd.xlane.f32.xlu0 %v50_v5 }
  0x18   :  { %v56_v10 = vmul.f32 %v290_v7, %v55_v9 }
  0x1a   :  { %v57_v11 = vadd.f32 %v290_v7, %v56_v10 }
  0x1c   :  { %v59_v14 = vsel %vm58_vm1, %v290_v7, %v57_v11  ;;  %v74_v7 = vld [vmem:[#allocation2 + $0x3] ss:$8 sm:$0x3] }
  0x1d   :  { %v166_v12 = vperm.slane %v74_v7, 0  ;;  %v167_v13 = vperm.slane %v74_v7, 1 }
  0x8a   :  { %v52_v16 = vpop.xlane.xlu0 %51 }
  0x8b   :  { %v405_v17 = vmul.f32 %v59_v14, %v52_v16  ;;  %v202_v16 = vperm.slane %v76_v8, 0 }
  0x8d   :  { %v65_v18 = vperm.slane %v405_v17, %v64_v15  ;;  %v206_v31 = vmul.f32 %v202_v16, %v405_v17 }
  0x8f   :  { %v67_v19 = vsub.f32 %v40_v0, %v65_v18  ;;  %v203_v18 = vperm.slane %v76_v8, 1 }
  0x91   :  { %78 = vst [vmem:[#allocation1] ss:$4 sm:$0xff] %v67_v19  ;;  %v118_v24 = vmul.f32 %v67_v19, %v67_v19  ;;  %v207_v33 = vmul.f32 %v203_v18, %v405_v17 }
  0x98   :  { %v80_v20 = vld.sshfl [vmem:[#allocation1 + $0x8] sm:$0xff pattern:$0x73625140]  ;;  %v79_v21 = vld.sshfl [vmem:[#allocation1] sm:$0xff pattern:$0x73625140] }
  0x99   :  { %85 = vrot.lane.b32.xlu1 %v80_v20, %s377_s0  ;;  %83 = vrot.lane.b32.xlu0 %v79_v21, %s377_s0  ;;  %99 = vst [vmem:[#allocation1] ss:$4 sm:$0xff] %v67_v19 }
  0xa0   :  { %v101_v22 = vld.sshfl [vmem:[#allocation1 + $0x8] sm:$0xff pattern:$0x73625140]  ;;  %v100_v23 = vld.sshfl [vmem:[#allocation1] sm:$0xff pattern:$0x73625140] }
  0xa1   :  { %106 = vrot.lane.b32.xlu2 %v101_v22, %s378_s1  ;;  %104 = vrot.lane.b32.xlu1 %v100_v23, %s378_s1  ;;  %119 = vst [vmem:[#allocation1] ss:$4 sm:$0xff] %v67_v19 }
  0xa8   :  { %v120_v25 = vld.sshfl [vmem:[#allocation1] sm:$0xff pattern:$0x73625140]  ;;  %v121_v26 = vld.sshfl [vmem:[#allocation1 + $0x8] sm:$0xff pattern:$0x73625140] }
  0xa9   :  { %131 = vst [vmem:[#allocation1] ss:$4 sm:$0xff] %v118_v24 }
  0xb0   :  { %v133_v27 = vld.sshfl [vmem:[#allocation1 + $0x8] sm:$0xff pattern:$0x73625140]  ;;  %v132_v28 = vld.sshfl [vmem:[#allocation1] sm:$0xff pattern:$0x73625140] }
  0xb1   :  { %194 = vst [vmem:[#allocation1] ss:$4 sm:$0xff] %v67_v19 }
  0xb8   :  { %v408_v29 = vld.sshfl [vmem:[#allocation1] sm:$0xff pattern:$0x73625140]  ;;  %v410_v30 = vld.sshfl [vmem:[#allocation1 + $0x8] sm:$0xff pattern:$0x73625140] }
  0xb9   :  { %210 = vst [vmem:[#allocation1] ss:$4 sm:$0xff] %v118_v24 }
  0xfb   :  { %v107_v45 = vpop.permute.xlu2 %106 }
 0x10b   :  { %v86_v34 = vpop.permute.xlu1 %85  ;;  %v84_v36 = vpop.permute.xlu0 %83 }
 0x10c   :  { %v90_v37 = vsel %vm89_vm2, %v84_v36, %v86_v34  ;;  %v91_v39 = vsel %vm89_vm2, %v86_v34, %v84_v36 }
 0x10d   :  { %v98_v41 = vmul.f32 %v94_v35, %v90_v37  ;;  %v97_v42 = vmul.f32 %v93_v38, %v91_v39 }
 0x10f   :  { %v129_v46 = vmul.f32 %v98_v41, %v98_v41  ;;  %v124_v50 = vadd.f32 %v120_v25, %v97_v42  ;;  %v125_v51 = vadd.f32 %v121_v26, %v98_v41  ;;  %v128_v59 = vmul.f32 %v97_v42, %v97_v42 }
 0x110   :  { %v217_v42 = vmul.f32 %v405_v17, %v405_v17 }
 0x111   :  { %v137_v57 = vadd.f32 %v133_v27, %v129_v46  ;;  %v136_v61 = vadd.f32 %v132_v28, %v128_v59 }
 0x113   :  { %v105_v47 = vpop.permute.xlu1 %104 }
 0x114   :  { %v109_v48 = vsel %vm108_vm3, %v105_v47, %v107_v45  ;;  %v110_v49 = vsel %vm108_vm3, %v107_v45, %v105_v47 }
 0x115   :  { %v116_v52 = vmul.f32 %v112_v43, %v109_v48  ;;  %v117_v53 = vmul.f32 %v113_v44, %v110_v49 }
 0x117   :  { %v139_v54 = vmul.f32 %v117_v53, %v117_v53  ;;  %v127_v55 = vadd.f32 %v125_v51, %v117_v53  ;;  %v126_v56 = vadd.f32 %v124_v50, %v116_v52  ;;  %v138_v60 = vmul.f32 %v116_v52, %v116_v52  ;;  %v211_v51 = vld.sshfl [vmem:[#allocation1] sm:$0xff pattern:$0x73625140]  ;;  %v212_v52 = vld.sshfl [vmem:[#allocation1 + $0x8] sm:$0xff pattern:$0x73625140] }
 0x118   :  { %v218_v53 = vmul.f32 %v217_v42, %v202_v16 }
 0x119   :  { %144 = vrot.lane.b32.xlu1 %v127_v55, %s379_s19  ;;  %142 = vrot.lane.b32.xlu2 %v126_v56, %s379_s19  ;;  %v141_v58 = vadd.f32 %v139_v54, %v137_v57  ;;  %v140_v62 = vadd.f32 %v138_v60, %v136_v61  ;;  %v219_v54 = vmul.f32 %v217_v42, %v203_v18 }
 0x11b   :  { %176 = vrot.lane.b32.xlu0 %v141_v58, %s379_s19 }
 0x121   :  { %160 = vrot.lane.b32.xlu1 %v127_v55, %s380_s20  ;;  %158 = vrot.lane.b32.xlu2 %v126_v56, %s380_s20 }
 0x129   :  { %184 = vrot.lane.b32.xlu1 %v140_v62, %s380_s20  ;;  %174 = vrot.lane.b32.xlu2 %v140_v62, %s379_s19 }
 0x131   :  { %186 = vrot.lane.b32.xlu2 %v141_v58, %s380_s20 }
 0x173   :  { %v143_v63 = vpop.permute.xlu2 %142 }
 0x17b   :  { %v159_v0 = vpop.permute.xlu2 %158 }
 0x183   :  { %v175_v9 = vpop.permute.xlu2 %174 }
 0x18b   :  { %v145_v2 = vpop.permute.xlu1 %144  ;;  %v187_v38 = vpop.permute.xlu2 %186 }
 0x18c   :  { %v147_v5 = vsel %vm146_vm4, %v143_v63, %v145_v2  ;;  %v148_v6 = vsel %vm146_vm4, %v145_v2, %v143_v63 }
 0x18d   :  { %v154_v10 = vmul.f32 %v150_v3, %v148_v6  ;;  %v155_v11 = vmul.f32 %v151_v4, %v147_v5  ;;  %v177_v14 = vpop.permute.xlu0 %176 }
 0x18e   :  { %v178_v25 = vsel %vm146_vm4, %v175_v9, %v177_v14  ;;  %v179_v26 = vsel %vm146_vm4, %v177_v14, %v175_v9 }
 0x18f   :  { %v156_v21 = vadd.f32 %v154_v10, %v126_v56  ;;  %v157_v22 = vadd.f32 %v155_v11, %v127_v55  ;;  %v180_v34 = vmul.f32 %v179_v26, %v150_v3  ;;  %v181_v35 = vmul.f32 %v178_v25, %v151_v4 }
 0x191   :  { %v182_v45 = vadd.f32 %v180_v34, %v140_v62  ;;  %v183_v46 = vadd.f32 %v181_v35, %v141_v58 }
 0x193   :  { %v161_v15 = vpop.permute.xlu1 %160 }
 0x194   :  { %v163_v19 = vsel %vm162_vm5, %v159_v0, %v161_v15  ;;  %v164_v20 = vsel %vm162_vm5, %v161_v15, %v159_v0 }
 0x195   :  { %v170_v23 = vmul.f32 %v166_v12, %v163_v19  ;;  %v171_v24 = vmul.f32 %v167_v13, %v164_v20 }
 0x197   :  { %v172_v27 = vadd.f32 %v170_v23, %v156_v21  ;;  %v173_v28 = vadd.f32 %v171_v24, %v157_v22 }
 0x199   :  { %v199_v36 = vsub.f32 %v172_v27, %v408_v29  ;;  %v200_v37 = vsub.f32 %v173_v28, %v410_v30 }
 0x19b   :  { %v208_v39 = vsub.f32 %v199_v36, %v206_v31  ;;  %v209_v40 = vsub.f32 %v200_v37, %v207_v33  ;;  %v185_v41 = vpop.permute.xlu1 %184 }
 0x19c   :  { %v188_v43 = vsel %vm162_vm5, %v185_v41, %v187_v38  ;;  %v189_v44 = vsel %vm162_vm5, %v187_v38, %v185_v41 }
 0x19d   :  { %v190_v47 = vmul.f32 %v188_v43, %v166_v12  ;;  %v191_v48 = vmul.f32 %v189_v44, %v167_v13  ;;  %v222_v29 = vmul.f32 %v208_v39, %v208_v39  ;;  %v223_v49 = vmul.f32 %v209_v40, %v209_v40 }
 0x19f   :  { %v192_v30 = vadd.f32 %v190_v47, %v182_v45  ;;  %v193_v50 = vadd.f32 %v191_v48, %v183_v46  ;;  %v224_v56 = vmul.f32 0.125, %v222_v29  ;;  %v225_v57 = vmul.f32 0.125, %v223_v49 }
 0x1a1   :  { %v215_v55 = vsub.f32 %v192_v30, %v211_v51  ;;  %v216_v17 = vsub.f32 %v193_v50, %v212_v52 }
 0x1a3   :  { %v220_v59 = vadd.f32 %v218_v53, %v215_v55  ;;  %v221_v60 = vadd.f32 %v219_v54, %v216_v17 }
 0x1a5   :  { %v226_v32 = vsub.f32 %v220_v59, %v224_v56  ;;  %v227_v61 = vsub.f32 %v221_v60, %v225_v57 }
 0x1a7   :  { %v228_v62 = vmul.f32 0.14285715, %v226_v32  ;;  %v229_v58 = vmul.f32 0.14285715, %v227_v61 }
 0x1a9   :  { %v230_v63 = vmax.f32 %v228_v62, 0.0  ;;  %v231_v0 = vmax.f32 %v229_v58, 0.0 }
 0x1ab   :  { %291 = vrsqrt.f32 %v230_v63  ;;  %vm239_vm6 = vcmp.eq.f32.partialorder %v230_v63, inf  ;;  %vm251_vm7 = vcmp.eq.f32.partialorder %v231_v0, inf  ;;  %v254_v15 = vand.u32 2147483648, %v231_v0 }
 0x1ac   :  { %293 = vrsqrt.f32 %v231_v0  ;;  %vm253_vm8 = vcmp.eq.f32.partialorder %v231_v0, 0.0  ;;  %v242_v19 = vand.u32 2147483648, %v230_v63  ;;  %vm241_vm9 = vcmp.eq.f32.partialorder %v230_v63, 0.0 }
 0x1b1   :  { %v292_v1 = vpop.eup %291 }
 0x1b2   :  { %v294_v2 = vpop.eup %293  ;;  %v233_v3 = vmul.f32 %v292_v1, %v230_v63 }
 0x1b3   :  { %v245_v4 = vmul.f32 %v294_v2, %v231_v0 }
 0x1b4   :  { %v234_v5 = vmul.f32 %v292_v1, %v233_v3 }
 0x1b5   :  { %v246_v6 = vmul.f32 %v294_v2, %v245_v4 }
 0x1b6   :  { %v235_v7 = vmul.f32 0.5, %v234_v5 }
 0x1b7   :  { %v247_v8 = vmul.f32 0.5, %v246_v6 }
 0x1b8   :  { %v236_v9 = vsub.f32 1.5, %v235_v7 }
 0x1b9   :  { %v248_v10 = vsub.f32 1.5, %v247_v8 }
 0x1ba   :  { %v237_v11 = vmul.f32 %v292_v1, %v236_v9 }
 0x1bb   :  { %v249_v12 = vmul.f32 %v294_v2, %v248_v10 }
 0x1bc   :  { %v238_v13 = vmul.f32 %v237_v11, %v230_v63 }
 0x1bd   :  { %v250_v14 = vmul.f32 %v249_v12, %v231_v0 }
 0x1be   :  { %v240_v16 = vsel %vm239_vm6, %v230_v63, %v238_v13 }
 0x1bf   :  { %v252_v18 = vsel %vm251_vm7, %v231_v0, %v250_v14  ;;  %v243_v22 = vsel %vm241_vm9, %v242_v19, %v240_v16 }
 0x1c0   :  { %v255_v20 = vsel %vm253_vm8, %v254_v15, %v252_v18 }
 0x1c1   :  { %v258_v21 = vrot.slane %v255_v20, 6 }
 0x1c3   :  { %v259_v23 = vsel %vm47_vm0, %v243_v22, %v258_v21 }
 0x1c4   :  { %261 = vst [vmem:[#allocation7] sm:$0xf] %v259_v23 }
 0x1c5   :  { %272 = dma.vmem_to_hbm [thread:$0]  %s268_s22, 64, %s270_s25, [#allocation4]  }
 0x1c6   :  { %371 = dma.done.wait [#allocation4], 64  }
 0x1c7   :  { %372 = vsyncadd [#allocation4], 4294967232 }
 0x1c8   :  { %277 = vsyncpa [#allocation3], 1 }
 0x1c9   :  { %278 = vsyncpa [#allocation6], 1 }
 0x1ca   :  { %279 = vsyncpa [#allocation4], 1 }

</bundles_post_ra>
